<compile_context>
chip_gen: v7x
topology: tpu7x:2x2x1
jax: 0.10.0
libtpu: 0.0.40
codegen_flags: <defaults>
</compile_context>

<pallas_src>
import functools
import math

import jax
import jax.numpy as jnp
from jax.experimental import pallas as pl
from jax.experimental.pallas import tpu as pltpu


def _round_up(x, m):
    return (x + m - 1) // m * m


def _largest_tile_dividing(n, cap):
    """Largest multiple of 128 that divides n (a 128-multiple) and is <= cap."""
    t = max(128, min(n, (cap // 128) * 128))
    while n % t:
        t -= 128
    return t


def _vmem_capacity_bytes():
    try:
        return int(pltpu.get_tpu_info().vmem_capacity_bytes)
    except Exception:
        return 64 * 1024 * 1024  # conservative fallback (v7x per-TC VMEM)


def _pad_to(a, shape):
    if tuple(a.shape) == tuple(shape):
        return a
    return jnp.pad(a, tuple((0, t - s) for s, t in zip(a.shape, shape)))


def _ffn_kernel(x_ref, w1_ref, b1_ref, w2_ref, b2_ref, o_ref, acc_ref, *, sub):
    k = pl.program_id(1)

    @pl.when(k == 0)
    def _init():
        acc_ref[...] = jnp.zeros_like(acc_ref)

    x = x_ref[...]                      # (tm, Dp) — loaded once, reused below
    th = w1_ref.shape[1]
    w_dtype = w2_ref.dtype

    # Sub-tile the hidden chunk with STATIC slices so the f32 `h` intermediate
    # stays (tm, sub) instead of (tm, th); each sub-chunk's contribution is
    # folded straight into the f32 accumulator (no HBM round trip).
    for j in range(th // sub):
        lo, hi = j * sub, (j + 1) * sub
        h = jnp.dot(x, w1_ref[:, lo:hi], preferred_element_type=jnp.float32)
        h = jnp.maximum(h + b1_ref[:, lo:hi].astype(jnp.float32), 0.0)
        acc_ref[...] += jnp.dot(h.astype(w_dtype), w2_ref[lo:hi, :],
                                preferred_element_type=jnp.float32)

    @pl.when(k == pl.num_programs(1) - 1)
    def _finish():
        o_ref[...] = (acc_ref[...]
                      + b2_ref[...].astype(jnp.float32)).astype(o_ref.dtype)


def prepare_params(w1, b1, w2, b2, dtype=None):
    """Pad (and optionally cast, e.g. to bf16) the FF parameters ONCE so
    ff_forward never re-pads the full weight matrices per call.
    Layout: w1 (n_embd, hidden), w2 (hidden, n_embd) — the (in, out) layout."""
    n_embd, hidden = w1.shape
    Dp = _round_up(n_embd, 128)
    Hp = _round_up(hidden, 128)
    w1p = _pad_to(w1, (Dp, Hp))
    b1p = _pad_to(b1.reshape(1, -1), (1, Hp))
    w2p = _pad_to(w2, (Hp, Dp))
    b2p = _pad_to(b2.reshape(1, -1), (1, Dp))
    if dtype is not None:
        w1p, b1p, w2p, b2p = (a.astype(dtype) for a in (w1p, b1p, w2p, b2p))
    return w1p, b1p, w2p, b2p


def ff_forward(x, w1, b1, w2, b2, *, tm_cap=1024, max_th=2048):
    """Fused FF forward: linear2(relu(linear1(x))).  x: (..., n_embd)."""
    orig_shape = x.shape
    n_embd = orig_shape[-1]
    M = int(math.prod(orig_shape[:-1]))
    d_in, hidden = w1.shape

    Dp = _round_up(n_embd, 128)
    assert d_in in (n_embd, Dp), "w1 must be (n_embd|padded, hidden)"
    assert w2.shape[0] == hidden and w2.shape[1] in (n_embd, Dp)

    Hp128 = _round_up(hidden, 128)
    it_w = jnp.dtype(w1.dtype).itemsize
    it_x = jnp.dtype(x.dtype).itemsize

    # ---------------- VMEM-aware tiling ----------------
    vmem_cap = _vmem_capacity_bytes()
    vmem_limit = max(32 * 1024 * 1024, min(int(vmem_cap * 0.9), 100 * 1024 * 1024))
    tile_budget = int(vmem_limit * 0.85)          # slack for internal temps

    # Weight-resident mode: both weight matrices live in VMEM, hidden axis not
    # chunked -> constant weight block index -> W1/W2 DMA'd exactly once.
    wres_bytes = 2 * (2 * Dp * Hp128 + Hp128 + Dp) * it_w   # 2x: double-buffered
    weight_resident = wres_bytes <= int(tile_budget * 0.6)

    if weight_resident:
        Hp = th = Hp128
    else:
        th = _largest_tile_dividing(Hp128, max_th)
        if th < min(512, Hp128):
            # Awkward hidden size: round Hp up to a multiple of a big chunk
            # rather than degrading to tiny hidden chunks (grid-step overhead
            # + per-step accumulator RMW).
            th = (max(512, min(max_th, Hp128)) // 128) * 128
            Hp = _round_up(Hp128, th)
        else:
            Hp = Hp128

    # Inner sub-tile width: bounds the f32 `h` intermediate to (tm, sub).
    sub = _largest_tile_dividing(th, 512)

    # Row tile: as large as the remaining budget allows (in chunked mode the
    # weight chunks are re-streamed once per row tile, so big row tiles raise
    # arithmetic intensity past the compute-bound threshold on v6e/v7x).
    weight_chunk_bytes = 2 * (2 * Dp * th + th + Dp) * it_w
    per_row_bytes = (2 * Dp * it_x            # x tile (double-buffered)
                     + 2 * Dp * it_x          # out tile (double-buffered)
                     + 4 * Dp                 # f32 accumulator
                     + 3 * sub * (4 + it_w))  # ~3 live h sub-tiles (+ cast copy)
    tm_max = (tile_budget - weight_chunk_bytes) // per_row_bytes
    tm_target = int(max(8, min(tm_cap, tm_max)))
    tm_target = (tm_target // 128) * 128 if tm_target >= 128 else (tm_target // 8) * 8

    tm_eff = min(tm_target, _round_up(M, 8))
    # Guarantee >= 2 row tiles so the "parallel" axis feeds both TCs on v7x.
    if _round_up(M, tm_eff) // tm_eff < 2 and tm_eff >= 16:
        tm_eff = _round_up((tm_eff + 1) // 2, 8)
    Mp = _round_up(M, tm_eff)

    # ---------------- pad / reshape (weights only if not pre-padded) --------
    x2 = _pad_to(x.reshape(M, n_embd), (Mp, Dp))
    w1p = _pad_to(w1, (Dp, Hp))
    b1p = _pad_to(b1 if b1.ndim == 2 else b1.reshape(1, -1), (1, Hp))
    w2p = _pad_to(w2, (Hp, Dp))
    b2p = _pad_to(b2 if b2.ndim == 2 else b2.reshape(1, -1), (1, Dp))

    n_rows, n_k = Mp // tm_eff, Hp // th
    grid = (n_rows, n_k)

    flops = 4 * M * n_embd * hidden                    # two matmuls
    w_streams = n_rows if n_k > 1 else 1               # weight re-stream count
    bytes_accessed = int(2 * Mp * Dp * it_x
                         + w_streams * (2 * Dp * Hp + Hp + Dp) * it_w)

    kernel = functools.partial(_ffn_kernel, sub=sub)

    out = pl.pallas_call(
        kernel,
        out_shape=jax.ShapeDtypeStruct((Mp, Dp), x.dtype),
        grid_spec=pltpu.PrefetchScalarGridSpec(
            num_scalar_prefetch=0,
            grid=grid,
            in_specs=[
                pl.BlockSpec((tm_eff, Dp), lambda i, k: (i, 0)),   # x rows
                pl.BlockSpec((Dp, th), lambda i, k: (0, k)),       # W1 chunk
                pl.BlockSpec((1, th), lambda i, k: (0, k)),        # b1 chunk
                pl.BlockSpec((th, Dp), lambda i, k: (k, 0)),       # W2 chunk
                pl.BlockSpec((1, Dp), lambda i, k: (0, 0)),        # b2
            ],
            out_specs=pl.BlockSpec((tm_eff, Dp), lambda i, k: (i, 0)),
            scratch_shapes=[pltpu.VMEM((tm_eff, Dp), jnp.float32)],
        ),
        compiler_params=pltpu.CompilerParams(
            dimension_semantics=("parallel", "arbitrary"),
            vmem_limit_bytes=vmem_limit,
        ),
        cost_estimate=pl.CostEstimate(
            flops=flops, transcendentals=0, bytes_accessed=bytes_accessed),
    )(x2, w1p, b1p, w2p, b2p)

    if (Mp, Dp) != (M, n_embd):
        out = out[:M, :n_embd]
    return out.reshape(orig_shape)


def init_params(key, n_embd, dtype=jnp.float32):
    """Mirror torch.nn.Linear default init U(-1/sqrt(fan_in), +1/sqrt(fan_in)).
    Weights stored as (in, out) — the transpose of PyTorch's (out, in)."""
    hidden = 8 * n_embd
    k1, k2, k3, k4 = jax.random.split(key, 4)
    lim1 = 1.0 / float(n_embd) ** 0.5
    lim2 = 1.0 / float(hidden) ** 0.5
    w1 = jax.random.uniform(k1, (n_embd, hidden), dtype, -lim1, lim1)
    b1 = jax.random.uniform(k2, (hidden,), dtype, -lim1, lim1)
    w2 = jax.random.uniform(k3, (hidden, n_embd), dtype, -lim2, lim2)
    b2 = jax.random.uniform(k4, (n_embd,), dtype, -lim2, lim2)
    return w1, b1, w2, b2


if __name__ == "__main__":
    # Small but lane-dense config (n_embd multiple of 128 -> zero padding ops).
    n_embd = 128
    B, S = 2, 8

    key = jax.random.PRNGKey(0)
    kx, kp = jax.random.split(key)
    x = jax.random.normal(kx, (B, S, n_embd), jnp.float32)
    w1, b1, w2, b2 = init_params(kp, n_embd)

    # Plain-JAX reference.
    ref = (jnp.maximum(x.reshape(-1, n_embd) @ w1 + b1, 0.0) @ w2 + b2)
    ref = ref.reshape(B, S, n_embd)

    # f32 parameter path.
    out = jax.block_until_ready(ff_forward(x, w1, b1, w2, b2))
    assert out.shape == (B, S, n_embd)
    err = float(jnp.max(jnp.abs(out - ref)))
    assert err < 2e-2, err

    # bf16 fast path: weights padded + cast ONCE (no per-call weight padding),
    # f32 accumulation inside the kernel.
    p_bf16 = prepare_params(w1, b1, w2, b2, dtype=jnp.bfloat16)
    out_bf16 = jax.block_until_ready(ff_forward(x.astype(jnp.bfloat16), *p_bf16))
    err_bf16 = float(jnp.max(jnp.abs(out_bf16.astype(jnp.float32) - ref)))
    assert err_bf16 < 0.25, err_bf16

    print("KERNEL_OK")
</pallas_src>

<mosaic_0001>
module attributes {stable_mosaic.version = 11 : i64} {
  func.func @_ffn_kernel(%arg0: i32, %arg1: i32, %arg2: memref<8x128xf32, #tpu.memory_space<vmem>>, %arg3: memref<128x1024xf32, #tpu.memory_space<vmem>>, %arg4: memref<1x1024xf32, #tpu.memory_space<vmem>>, %arg5: memref<1024x128xf32, #tpu.memory_space<vmem>>, %arg6: memref<1x128xf32, #tpu.memory_space<vmem>>, %arg7: memref<8x128xf32, #tpu.memory_space<vmem>>, %arg8: memref<8x128xf32, #tpu.memory_space<vmem>>) attributes {dimension_semantics = [#tpu.dimension_semantics<parallel>, #tpu.dimension_semantics<arbitrary>], iteration_bounds = array<i64: 2, 1>, scalar_prefetch = 0 : i64, scratch_operands = 1 : i64, tpu.core_type = #tpu.core_type<tc>, window_params = [{transform_indices = @transform_0, window_bounds = array<i64: 8, 128>}, {transform_indices = @transform_1, window_bounds = array<i64: 128, 1024>}, {transform_indices = @transform_2, window_bounds = array<i64: 1, 1024>}, {transform_indices = @transform_3, window_bounds = array<i64: 1024, 128>}, {pipeline_mode = #tpu.pipeline_mode<synchronous>, transform_indices = @transform_4, window_bounds = array<i64: 1, 128>}, {transform_indices = @transform_5, window_bounds = array<i64: 8, 128>}]} {
    %c0_i32 = arith.constant 0 : i32
    %0 = arith.cmpi eq, %arg1, %c0_i32 : i32
    %1 = arith.extui %0 : i1 to i32
    %c0_i32_0 = arith.constant 0 : i32
    %2 = arith.cmpi ne, %1, %c0_i32_0 : i32
    scf.if %2 {
      %cst_28 = arith.constant 0.000000e+00 : f32
      %31 = vector.broadcast %cst_28 : f32 to vector<8x128xf32>
      %c0_29 = arith.constant 0 : index
      %c0_30 = arith.constant 0 : index
      %32 = vector.load %arg8[%c0_29, %c0_30] : memref<8x128xf32, #tpu.memory_space<vmem>>, vector<8x128xf32>
      tpu.vector_store %arg8[%c0_29, %c0_30], %31 {strides = array<i32>} : memref<8x128xf32, #tpu.memory_space<vmem>>, vector<8x128xf32>,
    } else {
    }
    %c0 = arith.constant 0 : index
    %c0_1 = arith.constant 0 : index
    %3 = vector.load %arg2[%c0, %c0_1] : memref<8x128xf32, #tpu.memory_space<vmem>>, vector<8x128xf32>
    %c0_2 = arith.constant 0 : index
    %c0_3 = arith.constant 0 : index
    %4 = vector.load %arg3[%c0_2, %c0_3] : memref<128x1024xf32, #tpu.memory_space<vmem>>, vector<128x512xf32>
    %cst = arith.constant dense<0.000000e+00> : vector<8x512xf32>
    %5 = tpu.matmul %3, %4, %cst {dimension_numbers = #tpu.dot_dimension_numbers<[1], [0], [0], [1], [0, 0, 1, 1], [], []>} : vector<8x128xf32>, vector<128x512xf32>, vector<8x512xf32> -> vector<8x512xf32>
    %c0_4 = arith.constant 0 : index
    %c0_5 = arith.constant 0 : index
    %6 = vector.load %arg4[%c0_4, %c0_5] : memref<1x1024xf32, #tpu.memory_space<vmem>>, vector<1x512xf32>
    %7 = vector.broadcast %6 : vector<1x512xf32> to vector<8x512xf32>
    %8 = arith.addf %5, %7 : vector<8x512xf32>
    %cst_6 = arith.constant 0.000000e+00 : f32
    %9 = vector.broadcast %cst_6 : f32 to vector<8x512xf32>
    %10 = arith.maximumf %8, %9 : vector<8x512xf32>
    %c0_7 = arith.constant 0 : index
    %c0_8 = arith.constant 0 : index
    %11 = vector.load %arg8[%c0_7, %c0_8] : memref<8x128xf32, #tpu.memory_space<vmem>>, vector<8x128xf32>
    %c0_9 = arith.constant 0 : index
    %c0_10 = arith.constant 0 : index
    %12 = vector.load %arg5[%c0_9, %c0_10] : memref<1024x128xf32, #tpu.memory_space<vmem>>, vector<512x128xf32>
    %cst_11 = arith.constant dense<0.000000e+00> : vector<8x128xf32>
    %13 = tpu.matmul %10, %12, %cst_11 {dimension_numbers = #tpu.dot_dimension_numbers<[1], [0], [0], [1], [0, 0, 1, 1], [], []>} : vector<8x512xf32>, vector<512x128xf32>, vector<8x128xf32> -> vector<8x128xf32>
    %14 = arith.addf %11, %13 : vector<8x128xf32>
    %c0_12 = arith.constant 0 : index
    %c0_13 = arith.constant 0 : index
    %15 = vector.load %arg8[%c0_12, %c0_13] : memref<8x128xf32, #tpu.memory_space<vmem>>, vector<8x128xf32>
    tpu.vector_store %arg8[%c0_12, %c0_13], %14 {strides = array<i32>} : memref<8x128xf32, #tpu.memory_space<vmem>>, vector<8x128xf32>,
    %c0_14 = arith.constant 0 : index
    %c512 = arith.constant 512 : index
    %16 = vector.load %arg3[%c0_14, %c512] : memref<128x1024xf32, #tpu.memory_space<vmem>>, vector<128x512xf32>
    %cst_15 = arith.constant dense<0.000000e+00> : vector<8x512xf32>
    %17 = tpu.matmul %3, %16, %cst_15 {dimension_numbers = #tpu.dot_dimension_numbers<[1], [0], [0], [1], [0, 0, 1, 1], [], []>} : vector<8x128xf32>, vector<128x512xf32>, vector<8x512xf32> -> vector<8x512xf32>
    %c0_16 = arith.constant 0 : index
    %c512_17 = arith.constant 512 : index
    %18 = vector.load %arg4[%c0_16, %c512_17] : memref<1x1024xf32, #tpu.memory_space<vmem>>, vector<1x512xf32>
    %19 = vector.broadcast %18 : vector<1x512xf32> to vector<8x512xf32>
    %20 = arith.addf %17, %19 : vector<8x512xf32>
    %cst_18 = arith.constant 0.000000e+00 : f32
    %21 = vector.broadcast %cst_18 : f32 to vector<8x512xf32>
    %22 = arith.maximumf %20, %21 : vector<8x512xf32>
    %c0_19 = arith.constant 0 : index
    %c0_20 = arith.constant 0 : index
    %23 = vector.load %arg8[%c0_19, %c0_20] : memref<8x128xf32, #tpu.memory_space<vmem>>, vector<8x128xf32>
    %c512_21 = arith.constant 512 : index
    %c0_22 = arith.constant 0 : index
    %24 = vector.load %arg5[%c512_21, %c0_22] : memref<1024x128xf32, #tpu.memory_space<vmem>>, vector<512x128xf32>
    %cst_23 = arith.constant dense<0.000000e+00> : vector<8x128xf32>
    %25 = tpu.matmul %22, %24, %cst_23 {dimension_numbers = #tpu.dot_dimension_numbers<[1], [0], [0], [1], [0, 0, 1, 1], [], []>} : vector<8x512xf32>, vector<512x128xf32>, vector<8x128xf32> -> vector<8x128xf32>
    %26 = arith.addf %23, %25 : vector<8x128xf32>
    %c0_24 = arith.constant 0 : index
    %c0_25 = arith.constant 0 : index
    %27 = vector.load %arg8[%c0_24, %c0_25] : memref<8x128xf32, #tpu.memory_space<vmem>>, vector<8x128xf32>
    tpu.vector_store %arg8[%c0_24, %c0_25], %26 {strides = array<i32>} : memref<8x128xf32, #tpu.memory_space<vmem>>, vector<8x128xf32>,
    %c0_i32_26 = arith.constant 0 : i32
    %28 = arith.cmpi eq, %arg1, %c0_i32_26 : i32
    %29 = arith.extui %28 : i1 to i32
    %c0_i32_27 = arith.constant 0 : i32
    %30 = arith.cmpi ne, %29, %c0_i32_27 : i32
    scf.if %30 {
      %c0_28 = arith.constant 0 : index
      %c0_29 = arith.constant 0 : index
      %31 = vector.load %arg8[%c0_28, %c0_29] : memref<8x128xf32, #tpu.memory_space<vmem>>, vector<8x128xf32>
      %c0_30 = arith.constant 0 : index
      %c0_31 = arith.constant 0 : index
      %32 = vector.load %arg6[%c0_30, %c0_31] : memref<1x128xf32, #tpu.memory_space<vmem>>, vector<1x128xf32>
      %33 = vector.broadcast %32 : vector<1x128xf32> to vector<8x128xf32>
      %34 = arith.addf %31, %33 : vector<8x128xf32>
      %c0_32 = arith.constant 0 : index
      %c0_33 = arith.constant 0 : index
      %35 = vector.load %arg7[%c0_32, %c0_33] : memref<8x128xf32, #tpu.memory_space<vmem>>, vector<8x128xf32>
      tpu.vector_store %arg7[%c0_32, %c0_33], %34 {strides = array<i32>} : memref<8x128xf32, #tpu.memory_space<vmem>>, vector<8x128xf32>,
    } else {
    }
    return
  }
  func.func @transform_0(%arg0: i32, %arg1: i32) -> (i32, i32) {
    %c0_i32 = arith.constant 0 : i32
    %c0_i32_0 = arith.constant 0 : i32
    return %arg0, %c0_i32 : i32, i32
  }
  func.func @transform_1(%arg0: i32, %arg1: i32) -> (i32, i32) {
    %c0_i32 = arith.constant 0 : i32
    %c0_i32_0 = arith.constant 0 : i32
    return %c0_i32, %arg1 : i32, i32
  }
  func.func @transform_2(%arg0: i32, %arg1: i32) -> (i32, i32) {
    %c0_i32 = arith.constant 0 : i32
    %c0_i32_0 = arith.constant 0 : i32
    return %c0_i32, %arg1 : i32, i32
  }
  func.func @transform_3(%arg0: i32, %arg1: i32) -> (i32, i32) {
    %c0_i32 = arith.constant 0 : i32
    %c0_i32_0 = arith.constant 0 : i32
    return %arg1, %c0_i32 : i32, i32
  }
  func.func @transform_4(%arg0: i32, %arg1: i32) -> (i32, i32) {
    %c0_i32 = arith.constant 0 : i32
    %c0_i32_0 = arith.constant 0 : i32
    %c0_i32_1 = arith.constant 0 : i32
    return %c0_i32, %c0_i32_0 : i32, i32
  }
  func.func @transform_5(%arg0: i32, %arg1: i32) -> (i32, i32) {
    %c0_i32 = arith.constant 0 : i32
    %c0_i32_0 = arith.constant 0 : i32
    return %arg0, %c0_i32 : i32, i32
  }
}

</mosaic_0001>

<bundles_post_ra>
// kernel: tpu_custom_call.1
= control target key start
LH: loop header
LB: loop body
LE: loop exit
PB: predicated region body
PF: predicated region fallthrough
CT: control target
= control target key end

     0   :  { %10 = vsyncpa [#allocation4], 0  ;;  %s2422_s0 = inlined_call_operand.hbm [shape: f32[16,128], index: 0, kind: input, shape index: {}]   ;;  %s2423_s1 = inlined_call_operand.hbm [shape: f32[128,1024], index: 1, kind: input, shape index: {}]   ;;  %s2424_s2 = inlined_call_operand.hbm [shape: f32[1,1024], index: 2, kind: input, shape index: {}]   ;;  %s2425_s3 = inlined_call_operand.hbm [shape: f32[1024,128], index: 3, kind: input, shape index: {}]   ;;  %s2426_s4 = inlined_call_operand.vmem [shape: f32[1,128], index: 4, kind: input, shape index: {}]   ;;  %s2427_s5 = inlined_call_operand.hbm [shape: f32[16,128], index: 5, kind: output, shape index: {}]  }
   0x1   :  { %12 = vsyncpa [#allocation4 + $0x1], 0 }
   0x2   :  { %13 = vsyncpa [#allocation7], 0 }
   0x3   :  { %14 = vsyncpa [#allocation10], 0 }
   0x4   :  { %15 = vsyncpa [#allocation5], 0 }
   0x5   :  { %17 = vsyncpa [#allocation5 + $0x1], 0  ;;  %s2105_s18 = smov 0   ;;  %s2107_s19 = smov 0  }
   0x6   :  { %s2109_s20 = smov 0   ;;  %s2111_s21 = smov 0  }
   0x7   :  { %s2113_s22 = smov 0   ;;  %s2115_s23 = smov 0  }
   0x8 LB: > { %2434 = sst [smem:[#allocation16_spill]] %s2043_s18  ;;  %s1345_s24 = sadd.s32 4294967295, %s2063_s23   ;;  %s2063_s23 = sphi %s2115_s23, %s23_s23   ;;  %s2059_s22 = sphi %s2113_s22, %s2457_s22   ;;  %s2055_s21 = sphi %s2111_s21, %s2456_s21   ;;  %s2051_s20 = sphi %s2109_s20, %s2455_s20   ;;  %s2047_s19 = sphi %s2107_s19, %s2454_s19   ;;  %s2043_s18 = sphi %s2105_s18, %s2453_s18  }
   0x9   : > { %s1346_s25 = sadd.s32 4294967294, %s2063_s23   ;;  %p55_p0 = scmp.ne.s32.totalorder %s2047_s19, %s2043_s18 }
   0xa   : > { %p2139_p1 = scmp.eq.s32.totalorder %s1345_s24, 0  ;;  %p2143_p2 = scmp.eq.s32.totalorder %s1345_s24, 1 }
   0xb   : > { %p184_p3 = scmp.eq.s32.totalorder %s1346_s25, 1  ;;  %p1347_p5 = scmp.ge.s32.totalorder %s2063_s23, 1 }
   0xc   : > { %s2435_s26 = scalar_select %p2139_p1, 1, 0 }
   0xd   : > { %s2436_s27 = scalar_select %p2143_p2, 1, 0 }
   0xe   : > { %p2149_p4 = por %p2139_p1, %p55_p0  ;;  %p2154_p6 = por %p184_p3, %p55_p0 }
   0xf   : > { %p191_p7 = scmp.lt.s32.totalorder %s2063_s23, 3  ;;  %s2065_s6 = smov [#allocation6]  }
  0x10   : > { %s2437_s28 = scalar_select %p2149_p4, 1, 0 }
  0x11   : > { %s2438_s29 = scalar_select %p2154_p6, 1, 0 }
  0x12   : > { %p2159_p8 = pnand %p1347_p5, %p191_p7  ;;  %s206_s7 = sshll.u32 %s2065_s6, 4  ;;  %s2163_s7 = int_to_ptr.vmem [resolvable:$true] %s206_s7 }
  0x13   : > { %2439 = sst [smem:[#allocation17_spill]] %s2438_s29  ;;  %s2066_s9 = smov [#allocation8]  }
  0x14   : > { %s2440_s30 = scalar_select %p2159_p8, 1, 0 }
  0x15   : > { %p1777_p9 = pneg %p2159_p8  ;;  %s223_s10 = sshll.u32 %s2066_s9, 4  ;;  %s2174_s10 = int_to_ptr.vmem [resolvable:$true] %s223_s10 }
  0x16   : > { %s2067_s11 = smov [#allocation9]   ;;  %s1859_s15 = scalar_lea.hbm %s2423_s1, 16384 }
  0x17   : > { %p2170_p11 = pnand %p1777_p9, %p2139_p1  ;;  %s2176_s12 = sshll.u32 %s2067_s11, 4  ;;  %s237_s12 = int_to_ptr.vmem [resolvable:$true] %s2176_s12 }
  0x18   : > { %p1860_p12 = scmp.ne.s32.totalorder %s2423_s1, %s1859_s15  ;;  %p1866_p5 = scmp.lt.u32.totalorder %s1859_s15, %s2423_s1 }
  0x19   : > { %p2186_p13 = pneg %p2170_p11 }
  0x1b   : > { %p1862_p0 = pnand %p2186_p13, %p1860_p12 }
  0x1d   : > { %p1863_p3 = pneg %p1862_p0 }
  0x1f   : > { %p1868_p7 = pnand %p1866_p5, %p1863_p3 }
  0x21   : > { %1871 = shalt.err (!%p1868_p7)
}
  0x22   : > { %s1872_s9 = scalar_lea.vmem %s2163_s7, 16384  ;;  %p1880_p1 = scmp.lt.s32.totalorder %s2163_s7, %s2163_s7 }
  0x23   : > { %p1873_p9 = scmp.ne.s32.totalorder %s2163_s7, %s1872_s9  ;;  %p1881_p4 = scmp.lt.s32.totalorder %s1872_s9, %s1872_s9 }
  0x25   : > { %p1875_p10 = pnand %p1873_p9, %p2186_p13  ;;  %p1882_p12 = por %p1881_p4, %p1880_p1 }
  0x27   : > { %p1876_p6 = pneg %p1875_p10 }
  0x29   : > { %p1883_p0 = pnand %p1882_p12, %p1876_p6 }
  0x2b   : > { %1886 = shalt.err (!%p1883_p0)
}
  0x2c   : > { %s2068_s11 = smov 1024   ;;  %s2069_s13 = smov 64  }
  0x2d   : > { %1780 = dma.hbm_to_vmem [thread:$0]  (!%p2170_p11), %s2423_s1, 16384, %s2163_s7, [#allocation7], %s2068_s11, %s2068_s11, %s2069_s13  }
  0x2e   : > { %s1887_s25 = scalar_lea.hbm %s2424_s2, 128 }
  0x2f   : > { %p1888_p1 = scmp.ne.s32.totalorder %s2424_s2, %s1887_s25  ;;  %p1894_p10 = scmp.lt.u32.totalorder %s1887_s25, %s2424_s2 }
  0x31   : > { %p1890_p4 = pnand %p1888_p1, %p2186_p13 }
  0x33   : > { %p1891_p6 = pneg %p1890_p4 }
  0x35   : > { %p1896_p3 = pnand %p1894_p10, %p1891_p6 }
  0x37   : > { %1899 = shalt.err (!%p1896_p3)
}
  0x38   : > { %s1900_s7 = scalar_lea.vmem %s2174_s10, 128  ;;  %p1908_p12 = scmp.lt.s32.totalorder %s2174_s10, %s2174_s10 }
  0x39   : > { %p1901_p5 = scmp.ne.s32.totalorder %s2174_s10, %s1900_s7  ;;  %p1909_p0 = scmp.lt.s32.totalorder %s1900_s7, %s1900_s7 }
  0x3b   : > { %p1903_p7 = pnand %p1901_p5, %p2186_p13  ;;  %p1910_p1 = por %p1909_p0, %p1908_p12 }
  0x3d   : > { %p1904_p9 = pneg %p1903_p7 }
  0x3f   : > { %p1911_p4 = pnand %p1910_p1, %p1904_p9 }
  0x41   : > { %1914 = shalt.err (!%p1911_p4)
}
  0x42   : > { %1783 = dma.hbm_to_vmem [thread:$0]  (!%p2170_p11), %s2424_s2, 128, %s2174_s10, [#allocation7]  }
  0x43   : > { %s1915_s14 = scalar_lea.hbm %s2425_s3, 16384 }
  0x44   : > { %p1916_p6 = scmp.ne.s32.totalorder %s2425_s3, %s1915_s14  ;;  %p1922_p5 = scmp.lt.u32.totalorder %s1915_s14, %s2425_s3 }
  0x46   : > { %p1918_p10 = pnand %p1916_p6, %p2186_p13 }
  0x48   : > { %p1919_p3 = pneg %p1918_p10 }
  0x4a   : > { %p1924_p7 = pnand %p1922_p5, %p1919_p3 }
  0x4c   : > { %1927 = shalt.err (!%p1924_p7)
}
  0x4d   : > { %s1928_s6 = scalar_lea.vmem %s237_s12, 16384  ;;  %p1936_p1 = scmp.lt.s32.totalorder %s237_s12, %s237_s12 }
  0x4e   : > { %p1929_p9 = scmp.ne.s32.totalorder %s237_s12, %s1928_s6  ;;  %p1937_p4 = scmp.lt.s32.totalorder %s1928_s6, %s1928_s6 }
  0x50   : > { %p1931_p12 = pnand %p1929_p9, %p2186_p13  ;;  %p1938_p8 = por %p1937_p4, %p1936_p1 }
  0x52   : > { %p1932_p0 = pneg %p1931_p12 }
  0x54   : > { %p1939_p2 = pnand %p1938_p8, %p1932_p0 }
  0x56   : > { %1942 = shalt.err (!%p1939_p2)
}
  0x57   : > { %s2070_s10 = smov 128   ;;  %s2071_s24 = smov 8  }
  0x58   : > { %1786 = dma.hbm_to_vmem [thread:$0]  (!%p2170_p11), %s2425_s3, 16384, %s237_s12, [#allocation10], %s2070_s10, %s2070_s10, %s2071_s24  }
  0x59   : > { %s42_s18 = sadd.s32 1, %s2051_s20  ;;  %s35_s29 = sadd.s32 1, %s2059_s22 }
  0x5a   : > { %p49_p2 = scmp.ne.s32.totalorder %s2051_s20, %s2047_s19  ;;  %p37_p8 = scmp.ge.s32.totalorder %s35_s29, 2 }
  0x5b   : > { %p50_p13 = scmp.eq.s32.totalorder %s2063_s23, 0  ;;  %p2443_p6 = scmp.ne.s32.totalorder %s2436_s27, 0 }
  0x5c   : > { %p1798_p3 = scmp.lt.s32.totalorder %s2063_s23, 2  ;;  %s2459_s29 = smov (%p37_p8, %s35_s29), 0 }
  0x5d   : > { %p2256_p10 = por %p2443_p6, %p49_p2  ;;  %p51_p5 = por %p50_p13, %p49_p2 }
  0x5e   : > { %s253_s8 = sand.u32 1, %s2051_s20   ;;  %s39_s13 = ssub.s32 %s2059_s22, %s2459_s29 }
  0x5f   : > { %p40_p7 = scmp.eq.s32.totalorder %s39_s13, 0  ;;  %s1352_s12 = sshll.u32 %s253_s8, 3 }
  0x60   : > { %s1353_s14 = sshll.u32 %s2059_s22, 7  ;;  %s257_s25 = scalar_lea.vmem [#allocation3], %s1352_s12 }
  0x61   : > { %s2268_s15 = scalar_select %p40_p7, %s2051_s20, %s42_s18  }
  0x62   : > { %s2273_s27 = scalar_lea.hbm %s2422_s0, %s1353_s14  ;;  %s264_s6 = sshll.u32 %s257_s25, 4  ;;  %s2275_s6 = int_to_ptr.vmem [resolvable:$true] %s264_s6 }
  0x63   : > { %p2279_p11 = pnand %p1798_p3, %p51_p5  ;;  %s254_s24 = scalar_lea.sflag [#allocation4], %s253_s8 }
  0x64   : > { %s1943_s9 = scalar_lea.hbm %s2273_s27, 128  ;;  %s1948_s13 = scalar_lea.hbm %s2422_s0, 256 }
  0x65   : > { %p1944_p9 = scmp.ne.s32.totalorder %s2273_s27, %s1943_s9  ;;  %p1945_p12 = pneg %p2279_p11 }
  0x66   : > { %p1949_p4 = scmp.lt.u32.totalorder %s2273_s27, %s2422_s0  ;;  %p1950_p2 = scmp.lt.u32.totalorder %s1948_s13, %s1943_s9 }
  0x67   : > { %p1946_p0 = pnand %p1945_p12, %p1944_p9  ;;  %p1952_p13 = scmp.lt.u32.totalorder %s1943_s9, %s2273_s27 }
  0x68   : > { %p1951_p8 = por %p1950_p2, %p1949_p4 }
  0x69   : > { %p1947_p1 = pneg %p1946_p0 }
  0x6a   : > { %p1953_p6 = por %p1952_p13, %p1951_p8 }
  0x6c   : > { %p1954_p3 = pnand %p1953_p6, %p1947_p1 }
  0x6e   : > { %1957 = shalt.err (!%p1954_p3)
}
  0x6f   : > { %s1958_s8 = scalar_lea.vmem %s2275_s6, 128  ;;  %s2072_s16 = smov [#allocation3]  }
  0x70   : > { %p1959_p5 = scmp.ne.s32.totalorder %s2275_s6, %s1958_s8  ;;  %s1963_s17 = sshll.u32 %s2072_s16, 4  ;;  %s1964_s17 = int_to_ptr.vmem [resolvable:$false] %s1963_s17 }
  0x71   : > { %s1965_s25 = scalar_lea.vmem %s1964_s17, 256  ;;  %p1966_p0 = scmp.lt.s32.totalorder %s2275_s6, %s1964_s17 }
  0x72   : > { %p1961_p7 = pnand %p1959_p5, %p1945_p12  ;;  %p1967_p4 = scmp.lt.s32.totalorder %s1965_s25, %s1958_s8 }
  0x74   : > { %p1962_p9 = pneg %p1961_p7  ;;  %p1968_p2 = por %p1967_p4, %p1966_p0 }
  0x76   : > { %p1969_p8 = pnand %p1968_p2, %p1962_p9 }
  0x78   : > { %1972 = shalt.err (!%p1969_p8)
}
  0x79   : > { %1790 = dma.hbm_to_vmem [thread:$0]  (!%p2279_p11), %s2273_s27, 128, %s2275_s6, %s254_s24  }
  0x7a   : > { %p2446_p1 = scmp.ne.s32.totalorder %s2440_s30, 0 }
  0x7b   : > { %s2311_s9 = sand.u32 (!%p2446_p1), 1, %s2047_s19   ;;  %p2447_p12 = scmp.ne.s32.totalorder (!%p2446_p1), %s2437_s28, 0 }
  0x7c   : > { %273 = sbr.rel (%p2446_p1) target bundleno = 877 (0x36d), region = 40  ;;  %s1355_s7 = sshll.u32 (!%p2446_p1), %s2311_s9, 3 }
  0x7d   : > { %s276_s18 = scalar_lea.sflag (!%p2446_p1), [#allocation4], %s2311_s9  ;;  %s2317_s13 = scalar_lea.vmem (!%p2446_p1), [#allocation3], %s1355_s7 }
  0x83   : > { %2026 = dma.done.wait (%p2447_p12), %s276_s18, 128  }
  0x84   : > { %2028 = vsyncadd (%p2447_p12), %s276_s18, 4294967168  ;;  %p2448_p11 = scmp.ne.s32.totalorder %s2435_s26, 0 }
  0x86   : > { %2030 = dma.done.wait (%p2448_p11), [#allocation7], 16512  }
  0x87   : > { %2032 = vsyncadd (%p2448_p11), [#allocation7], 4294950784 }
  0x88   : > { %2034 = dma.done.wait (%p2448_p11), [#allocation10], 16384  }
  0x89   : > { %2036 = vsyncadd (%p2448_p11), [#allocation10], 4294950912  ;;  %v2073_v0 = vmov 0.0   ;;  %v328_v1 = vld [vmem:[#allocation6 + $0x8] sm:$0xff]  ;;  %v330_v3 = vld [vmem:[#allocation6 + $0x18] sm:$0xff]  ;;  %s1362_s30 = sshll.u32 %s2055_s21, 7 }
  0x8a   : > { %477 = vmatprep.mubr.f32.mxu0 %v2073_v0  ;;  %548 = vmatprep.mubr.f32.mxu1 %v2073_v0  ;;  %v332_v2 = vld [vmem:[#allocation6 + $0x48] sm:$0xff]  ;;  %v334_v5 = vld [vmem:[#allocation6 + $0x58] sm:$0xff]  ;;  %v327_v6 = vld [vmem:[#allocation6] sm:$0xff]  ;;  %s317_s27 = scalar_lea.vmem [#allocation11], %s1355_s7  ;;  %s2373_s12 = scalar_lea.hbm %s2427_s5, %s1362_s30 }
  0x8b   : > { %v1505_v4 = vpack.c.bf16 %v332_v2, %v328_v1  ;;  %v331_v7 = vld [vmem:[#allocation6 + $0x40] sm:$0xff]  ;;  %v1537_v8 = vpack.c.bf16 %v334_v5, %v330_v3  ;;  %v329_v10 = vld [vmem:[#allocation6 + $0x10] sm:$0xff]  ;;  %v336_v12 = vld [vmem:[#allocation6 + $0x88] sm:$0xff]  ;;  %s1232_s6 = sshll.u32 %s317_s27, 4  ;;  %s1219_s14 = scalar_lea.sflag [#allocation5], %s2311_s9  ;;  %s2375_s6 = int_to_ptr.vmem [resolvable:$true] %s1232_s6 }
  0x8c   : > { %v1507_v9 = vpack.c.bf16 %v331_v7, %v327_v6  ;;  %v333_v11 = vld [vmem:[#allocation6 + $0x50] sm:$0xff]  ;;  %v340_v14 = vld [vmem:[#allocation6 + $0xc8] sm:$0xff]  ;;  %v338_v15 = vld [vmem:[#allocation6 + $0x98] sm:$0xff]  ;;  %s1973_s8 = scalar_lea.vmem %s2375_s6, 128  ;;  %s2074_s21 = smov [#allocation11]  }
  0x8d   : > { %1506 = vmatprep.subr.bf16.mxu0 %v1505_v4  ;;  %v1539_v13 = vpack.c.bf16 %v333_v11, %v329_v10  ;;  %v342_v16 = vld [vmem:[#allocation6 + $0xd8] sm:$0xff]  ;;  %1538 = vmatprep.subr.bf16.mxu1 %v1537_v8  ;;  %v1509_v17 = vpack.c.bf16 %v340_v14, %v336_v12  ;;  %v335_v19 = vld [vmem:[#allocation6 + $0x80] sm:$0xff]  ;;  %v337_v21 = vld [vmem:[#allocation6 + $0x90] sm:$0xff]  ;;  %p1974_p13 = scmp.ne.s32.totalorder %s2375_s6, %s1973_s8  ;;  %s1977_s16 = sshll.u32 %s2074_s21, 4  ;;  %s1978_s16 = int_to_ptr.vmem [resolvable:$false] %s1977_s16 }
  0x8e   : > { %1508 = vmatpush1.bf16.msra.mxu0 %v1507_v9  ;;  %v1541_v18 = vpack.c.bf16 %v342_v16, %v338_v15  ;;  %v339_v20 = vld [vmem:[#allocation6 + $0xc0] sm:$0xff]  ;;  %v341_v23 = vld [vmem:[#allocation6 + $0xd0] sm:$0xff]  ;;  %v344_v24 = vld [vmem:[#allocation6 + $0x108] sm:$0xff]  ;;  %s1979_s17 = scalar_lea.vmem %s1978_s16, 256  ;;  %p1980_p5 = scmp.lt.s32.totalorder %s2375_s6, %s1978_s16 }
  0x8f   : > { %1540 = vmatpush1.bf16.msra.mxu1 %v1539_v13  ;;  %v1511_v22 = vpack.c.bf16 %v339_v20, %v335_v19  ;;  %v348_v25 = vld [vmem:[#allocation6 + $0x148] sm:$0xff]  ;;  %1510 = vmatprep.subr.bf16.mxu0 %v1509_v17  ;;  %v1543_v26 = vpack.c.bf16 %v341_v23, %v337_v21  ;;  %v346_v28 = vld [vmem:[#allocation6 + $0x118] sm:$0xff]  ;;  %v343_v30 = vld [vmem:[#allocation6 + $0x100] sm:$0xff]  ;;  %p1975_p6 = pnand %p1974_p13, %p2256_p10  ;;  %p1981_p7 = scmp.lt.s32.totalorder %s1979_s17, %s1973_s8 }
  0x90   : > { %1542 = vmatprep.subr.bf16.mxu1 %v1541_v18  ;;  %v1513_v27 = vpack.c.bf16 %v348_v25, %v344_v24  ;;  %v350_v29 = vld [vmem:[#allocation6 + $0x158] sm:$0xff]  ;;  %v347_v32 = vld [vmem:[#allocation6 + $0x140] sm:$0xff]  ;;  %v345_v33 = vld [vmem:[#allocation6 + $0x110] sm:$0xff] }
  0x91   : > { %v1545_v31 = vpack.c.bf16 %v350_v29, %v346_v28  ;;  %v349_v34 = vld [vmem:[#allocation6 + $0x150] sm:$0xff]  ;;  %v1515_v35 = vpack.c.bf16 %v347_v32, %v343_v30  ;;  %v352_v36 = vld [vmem:[#allocation6 + $0x188] sm:$0xff]  ;;  %v354_v38 = vld [vmem:[#allocation6 + $0x198] sm:$0xff]  ;;  %p1976_p3 = pneg %p1975_p6  ;;  %p1982_p9 = por %p1981_p7, %p1980_p5 }
  0x92   : > { %1512 = vmatpush1.bf16.msra.mxu0 %v1511_v22  ;;  %v356_v37 = vld [vmem:[#allocation6 + $0x1c8] sm:$0xff]  ;;  %v1547_v39 = vpack.c.bf16 %v349_v34, %v345_v33  ;;  %v358_v41 = vld [vmem:[#allocation6 + $0x1d8] sm:$0xff]  ;;  %v351_v42 = vld [vmem:[#allocation6 + $0x180] sm:$0xff] }
  0x93   : > { %1544 = vmatpush1.bf16.msra.mxu1 %v1543_v26  ;;  %1514 = vmatprep.subr.bf16.mxu0 %v1513_v27  ;;  %v1517_v40 = vpack.c.bf16 %v356_v37, %v352_v36  ;;  %v355_v43 = vld [vmem:[#allocation6 + $0x1c0] sm:$0xff]  ;;  %v1549_v44 = vpack.c.bf16 %v358_v41, %v354_v38  ;;  %v353_v45 = vld [vmem:[#allocation6 + $0x190] sm:$0xff]  ;;  %v360_v47 = vld [vmem:[#allocation6 + $0x208] sm:$0xff]  ;;  %p1983_p0 = pnand %p1982_p9, %p1976_p3 }
  0x94   : > { %1546 = vmatprep.subr.bf16.mxu1 %v1545_v31  ;;  %v357_v46 = vld [vmem:[#allocation6 + $0x1d0] sm:$0xff]  ;;  %v364_v48 = vld [vmem:[#allocation6 + $0x248] sm:$0xff]  ;;  %v362_v49 = vld [vmem:[#allocation6 + $0x218] sm:$0xff]  ;;  %v1519_v51 = vpack.c.bf16 %v355_v43, %v351_v42 }
  0x95   : > { %v366_v50 = vld [vmem:[#allocation6 + $0x258] sm:$0xff]  ;;  %v1551_v52 = vpack.c.bf16 %v357_v46, %v353_v45  ;;  %v1521_v53 = vpack.c.bf16 %v364_v48, %v360_v47  ;;  %v359_v54 = vld [vmem:[#allocation6 + $0x200] sm:$0xff]  ;;  %v361_v56 = vld [vmem:[#allocation6 + $0x210] sm:$0xff] }
  0x96   : > { %1516 = vmatpush1.bf16.msra.mxu0 %v1515_v35  ;;  %v363_v55 = vld [vmem:[#allocation6 + $0x240] sm:$0xff]  ;;  %v1553_v57 = vpack.c.bf16 %v366_v50, %v362_v49  ;;  %v365_v58 = vld [vmem:[#allocation6 + $0x250] sm:$0xff]  ;;  %v368_v59 = vld [vmem:[#allocation6 + $0x288] sm:$0xff] }
  0x97   : > { %1548 = vmatpush1.bf16.msra.mxu1 %v1547_v39  ;;  %1518 = vmatprep.subr.bf16.mxu0 %v1517_v40  ;;  %v372_v60 = vld [vmem:[#allocation6 + $0x2c8] sm:$0xff]  ;;  %v370_v61 = vld [vmem:[#allocation6 + $0x298] sm:$0xff]  ;;  %v1523_v63 = vpack.c.bf16 %v363_v55, %v359_v54  ;;  %v1555_v1 = vpack.c.bf16 %v365_v58, %v361_v56  ;;  %v367_v3 = vld [vmem:[#allocation6 + $0x280] sm:$0xff] }
  0x98   : > { %1550 = vmatprep.subr.bf16.mxu1 %v1549_v44  ;;  %v374_v62 = vld [vmem:[#allocation6 + $0x2d8] sm:$0xff]  ;;  %v1525_v2 = vpack.c.bf16 %v372_v60, %v368_v59  ;;  %v371_v4 = vld [vmem:[#allocation6 + $0x2c0] sm:$0xff]  ;;  %v369_v5 = vld [vmem:[#allocation6 + $0x290] sm:$0xff] }
  0x99   : > { %v1557_v6 = vpack.c.bf16 %v374_v62, %v370_v61  ;;  %v373_v7 = vld [vmem:[#allocation6 + $0x2d0] sm:$0xff]  ;;  %v376_v8 = vld [vmem:[#allocation6 + $0x308] sm:$0xff]  ;;  %v378_v10 = vld [vmem:[#allocation6 + $0x318] sm:$0xff]  ;;  %v1527_v12 = vpack.c.bf16 %v371_v4, %v367_v3 }
  0x9a   : > { %1520 = vmatpush1.bf16.msra.mxu0 %v1519_v51  ;;  %v380_v9 = vld [vmem:[#allocation6 + $0x348] sm:$0xff]  ;;  %v382_v11 = vld [vmem:[#allocation6 + $0x358] sm:$0xff]  ;;  %v1559_v13 = vpack.c.bf16 %v373_v7, %v369_v5  ;;  %v375_v15 = vld [vmem:[#allocation6 + $0x300] sm:$0xff] }
  0x9b   : > { %1552 = vmatpush1.bf16.msra.mxu1 %v1551_v52  ;;  %1522 = vmatprep.subr.bf16.mxu0 %v1521_v53  ;;  %v1529_v14 = vpack.c.bf16 %v380_v9, %v376_v8  ;;  %v379_v16 = vld [vmem:[#allocation6 + $0x340] sm:$0xff]  ;;  %v377_v17 = vld [vmem:[#allocation6 + $0x310] sm:$0xff]  ;;  %v1561_v18 = vpack.c.bf16 %v382_v11, %v378_v10  ;;  %v384_v20 = vld [vmem:[#allocation6 + $0x388] sm:$0xff] }
  0x9c   : > { %1554 = vmatprep.subr.bf16.mxu1 %v1553_v57  ;;  %v381_v19 = vld [vmem:[#allocation6 + $0x350] sm:$0xff]  ;;  %v388_v21 = vld [vmem:[#allocation6 + $0x3c8] sm:$0xff]  ;;  %v386_v22 = vld [vmem:[#allocation6 + $0x398] sm:$0xff]  ;;  %v1531_v24 = vpack.c.bf16 %v379_v16, %v375_v15 }
  0x9d   : > { %v390_v23 = vld [vmem:[#allocation6 + $0x3d8] sm:$0xff]  ;;  %v1563_v25 = vpack.c.bf16 %v381_v19, %v377_v17  ;;  %v1533_v26 = vpack.c.bf16 %v388_v21, %v384_v20  ;;  %v383_v27 = vld [vmem:[#allocation6 + $0x380] sm:$0xff]  ;;  %v385_v29 = vld [vmem:[#allocation6 + $0x390] sm:$0xff] }
  0x9e   : > { %1524 = vmatpush1.bf16.msra.mxu0 %v1523_v63  ;;  %v387_v28 = vld [vmem:[#allocation6 + $0x3c0] sm:$0xff]  ;;  %v1565_v30 = vpack.c.bf16 %v390_v23, %v386_v22  ;;  %v389_v31 = vld [vmem:[#allocation6 + $0x3d0] sm:$0xff]  ;;  %v576_v32 = vld [vmem:[#allocation9 + $0x80] sm:$0xff] }
  0x9f   : > { %1556 = vmatpush1.bf16.msra.mxu1 %v1555_v1  ;;  %1526 = vmatprep.subr.bf16.mxu0 %v1525_v2  ;;  %v577_v33 = vld [vmem:[#allocation9 + $0x88] sm:$0xff]  ;;  %v608_v34 = vld [vmem:[#allocation9 + $0x180] sm:$0xff]  ;;  %v1535_v36 = vpack.c.bf16 %v387_v28, %v383_v27  ;;  %v1567_v37 = vpack.c.bf16 %v389_v31, %v385_v29  ;;  %v578_v44 = vld [vmem:[#allocation9 + $0x90] sm:$0xff] }
  0xa0   : > { %1558 = vmatprep.subr.bf16.mxu1 %v1557_v6  ;;  %v609_v35 = vld [vmem:[#allocation9 + $0x188] sm:$0xff]  ;;  %v1569_v38 = vpack.c.bf16 %v577_v33, %v576_v32  ;;  %v560_v39 = vld [vmem:[#allocation9] sm:$0xff]  ;;  %v579_v45 = vld [vmem:[#allocation9 + $0x98] sm:$0xff] }
  0xa1   : > { %v561_v40 = vld [vmem:[#allocation9 + $0x8] sm:$0xff]  ;;  %v592_v41 = vld [vmem:[#allocation9 + $0x100] sm:$0xff]  ;;  %v1601_v42 = vpack.c.bf16 %v609_v35, %v608_v34  ;;  %v610_v46 = vld [vmem:[#allocation9 + $0x190] sm:$0xff]  ;;  %v1573_v51 = vpack.c.bf16 %v579_v45, %v578_v44 }
  0xa2   : > { %1528 = vmatpush1.bf16.msra.mxu0 %v1527_v12  ;;  %v593_v43 = vld [vmem:[#allocation9 + $0x108] sm:$0xff]  ;;  %v611_v47 = vld [vmem:[#allocation9 + $0x198] sm:$0xff]  ;;  %v1571_v49 = vpack.c.bf16 %v561_v40, %v560_v39  ;;  %v562_v52 = vld [vmem:[#allocation9 + $0x10] sm:$0xff] }
  0xa3   : > { %1560 = vmatpush1.bf16.msra.mxu1 %v1559_v13  ;;  %1530 = vmatprep.subr.bf16.mxu0 %v1529_v14  ;;  %v2334_v48 = vld [vmem:[%s2317_s13] sm:$0xff]  ;;  %v1603_v50 = vpack.c.bf16 %v593_v43, %v592_v41  ;;  %v563_v53 = vld [vmem:[#allocation9 + $0x18] sm:$0xff]  ;;  %v1605_v55 = vpack.c.bf16 %v611_v47, %v610_v46  ;;  %v580_v57 = vld [vmem:[#allocation9 + $0xa0] sm:$0xff] }
  0xa4   : > { %1562 = vmatprep.subr.bf16.mxu1 %v1561_v18  ;;  %v594_v54 = vld [vmem:[#allocation9 + $0x110] sm:$0xff]  ;;  %v595_v56 = vld [vmem:[#allocation9 + $0x118] sm:$0xff]  ;;  %v581_v58 = vld [vmem:[#allocation9 + $0xa8] sm:$0xff]  ;;  %v1575_v61 = vpack.c.bf16 %v563_v53, %v562_v52 }
  0xa5   : > { %v612_v59 = vld [vmem:[#allocation9 + $0x1a0] sm:$0xff]  ;;  %v613_v60 = vld [vmem:[#allocation9 + $0x1a8] sm:$0xff]  ;;  %v1607_v62 = vpack.c.bf16 %v595_v56, %v594_v54  ;;  %v1577_v63 = vpack.c.bf16 %v581_v58, %v580_v57  ;;  %v582_v6 = vld [vmem:[#allocation9 + $0xb0] sm:$0xff] }
  0xa6   : > { %1532 = vmatpush1.bf16.msra.mxu0 %v1531_v24  ;;  %v564_v1 = vld [vmem:[#allocation9 + $0x20] sm:$0xff]  ;;  %v565_v2 = vld [vmem:[#allocation9 + $0x28] sm:$0xff]  ;;  %v1609_v4 = vpack.c.bf16 %v613_v60, %v612_v59  ;;  %v583_v7 = vld [vmem:[#allocation9 + $0xb8] sm:$0xff] }
  0xa7   : > { %1564 = vmatpush1.bf16.msra.mxu1 %v1563_v25  ;;  %1534 = vmatprep.subr.bf16.mxu0 %v1533_v26  ;;  %v596_v3 = vld [vmem:[#allocation9 + $0x120] sm:$0xff]  ;;  %v597_v5 = vld [vmem:[#allocation9 + $0x128] sm:$0xff]  ;;  %v614_v8 = vld [vmem:[#allocation9 + $0x1b0] sm:$0xff]  ;;  %v1579_v10 = vpack.c.bf16 %v565_v2, %v564_v1  ;;  %v1581_v12 = vpack.c.bf16 %v583_v7, %v582_v6 }
  0xa8   : > { %1566 = vmatprep.subr.bf16.mxu1 %v1565_v30  ;;  %v615_v9 = vld [vmem:[#allocation9 + $0x1b8] sm:$0xff]  ;;  %v1611_v11 = vpack.c.bf16 %v597_v5, %v596_v3  ;;  %v566_v13 = vld [vmem:[#allocation9 + $0x30] sm:$0xff]  ;;  %v584_v18 = vld [vmem:[#allocation9 + $0xc0] sm:$0xff] }
  0xa9   : > { %v567_v14 = vld [vmem:[#allocation9 + $0x38] sm:$0xff]  ;;  %v598_v15 = vld [vmem:[#allocation9 + $0x130] sm:$0xff]  ;;  %v1613_v16 = vpack.c.bf16 %v615_v9, %v614_v8  ;;  %v585_v19 = vld [vmem:[#allocation9 + $0xc8] sm:$0xff] }
  0xaa   : > { %1536 = vmatpush1.bf16.msra.mxu0 %v1535_v36  ;;  %v599_v17 = vld [vmem:[#allocation9 + $0x138] sm:$0xff]  ;;  %v616_v20 = vld [vmem:[#allocation9 + $0x1c0] sm:$0xff]  ;;  %v617_v21 = vld [vmem:[#allocation9 + $0x1c8] sm:$0xff]  ;;  %v1583_v22 = vpack.c.bf16 %v567_v14, %v566_v13  ;;  %v1585_v24 = vpack.c.bf16 %v585_v19, %v584_v18 }
  0xab   : > { %1568 = vmatpush1.bf16.msra.mxu1 %v1567_v37  ;;  %1570 = vmatprep.subr.bf16.mxu0 %v1569_v38  ;;  %v1615_v23 = vpack.c.bf16 %v599_v17, %v598_v15  ;;  %v568_v25 = vld [vmem:[#allocation9 + $0x40] sm:$0xff]  ;;  %v569_v26 = vld [vmem:[#allocation9 + $0x48] sm:$0xff]  ;;  %v1617_v28 = vpack.c.bf16 %v617_v21, %v616_v20  ;;  %v586_v30 = vld [vmem:[#allocation9 + $0xd0] sm:$0xff] }
  0xac   : > { %1602 = vmatprep.subr.bf16.mxu1 %v1601_v42  ;;  %v600_v27 = vld [vmem:[#allocation9 + $0x140] sm:$0xff]  ;;  %v601_v29 = vld [vmem:[#allocation9 + $0x148] sm:$0xff]  ;;  %v587_v31 = vld [vmem:[#allocation9 + $0xd8] sm:$0xff]  ;;  %v1587_v34 = vpack.c.bf16 %v569_v26, %v568_v25 }
  0xad   : > { %478 = vmatmul.mubr.f32.vlgmr.msra.gmra.mrb[0].mxu0 %v2334_v48  ;;  %v618_v32 = vld [vmem:[#allocation9 + $0x1d0] sm:$0xff]  ;;  %v619_v33 = vld [vmem:[#allocation9 + $0x1d8] sm:$0xff]  ;;  %v1619_v35 = vpack.c.bf16 %v601_v29, %v600_v27  ;;  %v1589_v36 = vpack.c.bf16 %v587_v31, %v586_v30  ;;  %v588_v42 = vld [vmem:[#allocation9 + $0xe0] sm:$0xff] }
  0xae   : > { %549 = vmatmul.mubr.f32.vlgmr.msra.gmra.mrb[0].mxu1 %v2334_v48  ;;  %1572 = vmatpush3.bf16.msra.mxu0 %v1571_v49  ;;  %v570_v37 = vld [vmem:[#allocation9 + $0x50] sm:$0xff]  ;;  %v571_v38 = vld [vmem:[#allocation9 + $0x58] sm:$0xff]  ;;  %v1621_v40 = vpack.c.bf16 %v619_v33, %v618_v32  ;;  %v589_v43 = vld [vmem:[#allocation9 + $0xe8] sm:$0xff] }
  0xaf   : > { %1604 = vmatpush3.bf16.msra.mxu1 %v1603_v50  ;;  %1574 = vmatprep.subr.bf16.mxu0 %v1573_v51  ;;  %v602_v39 = vld [vmem:[#allocation9 + $0x150] sm:$0xff]  ;;  %v603_v41 = vld [vmem:[#allocation9 + $0x158] sm:$0xff]  ;;  %v620_v44 = vld [vmem:[#allocation9 + $0x1e0] sm:$0xff]  ;;  %v1591_v46 = vpack.c.bf16 %v571_v38, %v570_v37  ;;  %v1593_v49 = vpack.c.bf16 %v589_v43, %v588_v42 }
  0xb0   : > { %1606 = vmatprep.subr.bf16.mxu1 %v1605_v55  ;;  %v621_v45 = vld [vmem:[#allocation9 + $0x1e8] sm:$0xff]  ;;  %v1623_v47 = vpack.c.bf16 %v603_v41, %v602_v39  ;;  %v572_v50 = vld [vmem:[#allocation9 + $0x60] sm:$0xff]  ;;  %v590_v57 = vld [vmem:[#allocation9 + $0xf0] sm:$0xff] }
  0xb1   : > { %v573_v51 = vld [vmem:[#allocation9 + $0x68] sm:$0xff]  ;;  %v1625_v52 = vpack.c.bf16 %v621_v45, %v620_v44  ;;  %v604_v53 = vld [vmem:[#allocation9 + $0x160] sm:$0xff]  ;;  %v591_v58 = vld [vmem:[#allocation9 + $0xf8] sm:$0xff] }
  0xb2   : > { %1576 = vmatpush3.bf16.msra.mxu0 %v1575_v61  ;;  %v605_v54 = vld [vmem:[#allocation9 + $0x168] sm:$0xff]  ;;  %v1595_v55 = vpack.c.bf16 %v573_v51, %v572_v50  ;;  %v622_v59 = vld [vmem:[#allocation9 + $0x1f0] sm:$0xff]  ;;  %v1597_v60 = vpack.c.bf16 %v591_v58, %v590_v57  ;;  %v623_v61 = vld [vmem:[#allocation9 + $0x1f8] sm:$0xff] }
  0xb3   : > { %1608 = vmatpush3.bf16.msra.mxu1 %v1607_v62  ;;  %1578 = vmatprep.subr.bf16.mxu0 %v1577_v63  ;;  %v1627_v56 = vpack.c.bf16 %v605_v54, %v604_v53  ;;  %v574_v62 = vld [vmem:[#allocation9 + $0x70] sm:$0xff]  ;;  %v575_v63 = vld [vmem:[#allocation9 + $0x78] sm:$0xff]  ;;  %v1629_v1 = vpack.c.bf16 %v623_v61, %v622_v59  ;;  %v767_v6 = vld [vmem:[#allocation6 + $0x28] sm:$0xff] }
  0xb4   : > { %1610 = vmatprep.subr.bf16.mxu1 %v1609_v4  ;;  %v1599_v2 = vpack.c.bf16 %v575_v63, %v574_v62  ;;  %v606_v3 = vld [vmem:[#allocation9 + $0x170] sm:$0xff]  ;;  %v607_v4 = vld [vmem:[#allocation9 + $0x178] sm:$0xff]  ;;  %v771_v7 = vld [vmem:[#allocation6 + $0x68] sm:$0xff] }
  0xb5   : > { %v1631_v5 = vpack.c.bf16 %v607_v4, %v606_v3  ;;  %v769_v8 = vld [vmem:[#allocation6 + $0x38] sm:$0xff]  ;;  %v1633_v9 = vpack.c.bf16 %v771_v7, %v767_v6  ;;  %v391_v15 = vld [vmem:[#allocation8] sm:$0xf]  ;;  %v768_v29 = vld [vmem:[#allocation6 + $0x30] sm:$0xff] }
  0xb6   : > { %1580 = vmatpush3.bf16.msra.mxu0 %v1579_v10  ;;  %v773_v10 = vld [vmem:[#allocation6 + $0x78] sm:$0xff]  ;;  %v766_v27 = vld [vmem:[#allocation6 + $0x20] sm:$0xff]  ;;  %v772_v33 = vld [vmem:[#allocation6 + $0x70] sm:$0xff] }
  0xb7   : > { %1612 = vmatpush3.bf16.msra.mxu1 %v1611_v11  ;;  %1582 = vmatprep.subr.bf16.mxu0 %v1581_v12  ;;  %v1665_v11 = vpack.c.bf16 %v773_v10, %v769_v8  ;;  %v393_v12 = vlaneseq  ;;  %v777_v37 = vld [vmem:[#allocation6 + $0xb8] sm:$0xff]  ;;  %v1667_v43 = vpack.c.bf16 %v772_v33, %v768_v29  ;;  %v774_v45 = vld [vmem:[#allocation6 + $0xa0] sm:$0xff]  ;;  %v780_v51 = vld [vmem:[#allocation6 + $0xf0] sm:$0xff] }
  0xb8   : > { %1614 = vmatprep.subr.bf16.mxu1 %v1613_v16  ;;  %v781_v38 = vld [vmem:[#allocation6 + $0xf8] sm:$0xff]  ;;  %v787_v53 = vld [vmem:[#allocation6 + $0x168] sm:$0xff]  ;;  %v782_v59 = vld [vmem:[#allocation6 + $0x120] sm:$0xff] }
  0xb9   : > { %v2338_v13 = vshrl.u32 %v393_v12, 7  ;;  %v1669_v50 = vpack.c.bf16 %v781_v38, %v777_v37  ;;  %v785_v54 = vld [vmem:[#allocation6 + $0x138] sm:$0xff]  ;;  %v784_v61 = vld [vmem:[#allocation6 + $0x130] sm:$0xff]  ;;  %v790_v8 = vld [vmem:[#allocation6 + $0x1a0] sm:$0xff] }
  0xba   : > { %1584 = vmatpush3.bf16.msra.mxu0 %v1583_v22  ;;  %v788_v63 = vld [vmem:[#allocation6 + $0x170] sm:$0xff]  ;;  %v793_v3 = vld [vmem:[#allocation6 + $0x1b8] sm:$0xff]  ;;  %v807_v29 = vld [vmem:[#allocation6 + $0x2a8] sm:$0xff] }
  0xbb   : > { %1616 = vmatpush3.bf16.msra.mxu1 %v1615_v23  ;;  %1586 = vmatprep.subr.bf16.mxu0 %v1585_v24  ;;  %v395_v14 = vsub.s32 0, %v2338_v13  ;;  %v403_v16 = vsub.s32 2, %v2338_v13  ;;  %v399_v17 = vsub.s32 1, %v2338_v13  ;;  %v407_v18 = vsub.s32 3, %v2338_v13  ;;  %v797_v4 = vld [vmem:[#allocation6 + $0x1f8] sm:$0xff]  ;;  %v792_v10 = vld [vmem:[#allocation6 + $0x1b0] sm:$0xff] }
  0xbc   : > { %1618 = vmatprep.subr.bf16.mxu1 %v1617_v28  ;;  %v770_v28 = vld [vmem:[#allocation6 + $0x60] sm:$0xff]  ;;  %v1675_v6 = vpack.c.bf16 %v788_v63, %v784_v61  ;;  %v796_v12 = vld [vmem:[#allocation6 + $0x1f0] sm:$0xff] }
  0xbd   : > { %v396_v19 = vrot.slane %v391_v15, %v395_v14  ;;  %v404_v20 = vrot.slane %v391_v15, %v403_v16  ;;  %v400_v21 = vrot.slane %v391_v15, %v399_v17  ;;  %v408_v22 = vrot.slane %v391_v15, %v407_v18  ;;  %v799_v15 = vld [vmem:[#allocation6 + $0x228] sm:$0xff]  ;;  %v810_v37 = vld [vmem:[#allocation6 + $0x2e0] sm:$0xff]  ;;  %v808_v38 = vld [vmem:[#allocation6 + $0x2b0] sm:$0xff] }
  0xbe   : > { %1588 = vmatpush3.bf16.msra.mxu0 %v1587_v34  ;;  %v775_v34 = vld [vmem:[#allocation6 + $0xa8] sm:$0xff]  ;;  %v822_v61 = vld [vmem:[#allocation6 + $0x3a0] sm:$0xff] }
  0xbf   : > { %1620 = vmatpush3.bf16.msra.mxu1 %v1619_v35  ;;  %1590 = vmatprep.subr.bf16.mxu0 %v1589_v36  ;;  %v779_v35 = vld [vmem:[#allocation6 + $0xe8] sm:$0xff] }
  0xc0   : > { %1622 = vmatprep.subr.bf16.mxu1 %v1621_v40  ;;  %v1635_v40 = vpack.c.bf16 %v770_v28, %v766_v27  ;;  %v1637_v44 = vpack.c.bf16 %v779_v35, %v775_v34  ;;  %v804_v28 = vld [vmem:[#allocation6 + $0x270] sm:$0xff] }
  0xc2   : > { %1592 = vmatpush3.bf16.msra.mxu0 %v1591_v46  ;;  %v778_v46 = vld [vmem:[#allocation6 + $0xe0] sm:$0xff] }
  0xc3   : > { %1624 = vmatpush3.bf16.msra.mxu1 %v1623_v47  ;;  %1594 = vmatprep.subr.bf16.mxu0 %v1593_v49  ;;  %v776_v47 = vld [vmem:[#allocation6 + $0xb0] sm:$0xff] }
  0xc4   : > { %1626 = vmatprep.subr.bf16.mxu1 %v1625_v52  ;;  %v783_v52 = vld [vmem:[#allocation6 + $0x128] sm:$0xff]  ;;  %v1671_v57 = vpack.c.bf16 %v780_v51, %v776_v47  ;;  %v816_v51 = vld [vmem:[#allocation6 + $0x330] sm:$0xff] }
  0xc5   : > { %v1641_v58 = vpack.c.bf16 %v787_v53, %v783_v52  ;;  %v820_v53 = vld [vmem:[#allocation6 + $0x370] sm:$0xff] }
  0xc6   : > { %1596 = vmatpush3.bf16.msra.mxu0 %v1595_v55  ;;  %v789_v55 = vld [vmem:[#allocation6 + $0x178] sm:$0xff] }
  0xc7   : > { %1628 = vmatpush3.bf16.msra.mxu1 %v1627_v56  ;;  %1598 = vmatprep.subr.bf16.mxu0 %v1597_v60  ;;  %v1639_v56 = vpack.c.bf16 %v778_v46, %v774_v45  ;;  %v786_v60 = vld [vmem:[#allocation6 + $0x160] sm:$0xff]  ;;  %v1673_v62 = vpack.c.bf16 %v789_v55, %v785_v54  ;;  %v823_v54 = vld [vmem:[#allocation6 + $0x3a8] sm:$0xff] }
  0xc8   : > { %1630 = vmatprep.subr.bf16.mxu1 %v1629_v1  ;;  %v791_v1 = vld [vmem:[#allocation6 + $0x1a8] sm:$0xff] }
  0xc9   : > { %v827_v55 = vld [vmem:[#allocation6 + $0x3e8] sm:$0xff] }
  0xca   : > { %1600 = vmatpush3.bf16.msra.mxu0 %v1599_v2  ;;  %v795_v2 = vld [vmem:[#allocation6 + $0x1e8] sm:$0xff] }
  0xcb   : > { %1632 = vmatpush3.bf16.msra.mxu1 %v1631_v5  ;;  %1634 = vmatprep.subr.bf16.mxu0 %v1633_v9  ;;  %v1643_v5 = vpack.c.bf16 %v786_v60, %v782_v59  ;;  %v1645_v7 = vpack.c.bf16 %v795_v2, %v791_v1  ;;  %v794_v9 = vld [vmem:[#allocation6 + $0x1e0] sm:$0xff]  ;;  %v1691_v59 = vpack.c.bf16 %v820_v53, %v816_v51  ;;  %v824_v1 = vld [vmem:[#allocation6 + $0x3b0] sm:$0xff]  ;;  %v1037_v53 = vld [vmem:[#allocation9 + $0x330] sm:$0xff] }
  0xcc   : > { %1666 = vmatprep.subr.bf16.mxu1 %v1665_v11  ;;  %v1677_v11 = vpack.c.bf16 %v797_v4, %v793_v3  ;;  %v1661_v60 = vpack.c.bf16 %v827_v55, %v823_v54  ;;  %v828_v2 = vld [vmem:[#allocation6 + $0x3f0] sm:$0xff]  ;;  %v1006_v51 = vld [vmem:[#allocation9 + $0x238] sm:$0xff]  ;;  %v1023_v55 = vld [vmem:[#allocation9 + $0x2c0] sm:$0xff] }
  0xcd   : > { %v1695_v4 = vpack.c.bf16 %v828_v2, %v824_v1  ;;  %v1038_v54 = vld [vmem:[#allocation9 + $0x338] sm:$0xff]  ;;  %v1039_v1 = vld [vmem:[#allocation9 + $0x340] sm:$0xff] }
 0x180   : > { %v479_v23 = vpop.f32.mrb[0].mxu0 }
 0x181   : > { %v480_v24 = vadd.f32 %v479_v23, %v396_v19  ;;  %v550_v25 = vpop.f32.mrb[0].mxu1  ;;  %v481_v26 = vpop.f32.mrb[1].mxu0  ;;  %v803_v19 = vld [vmem:[#allocation6 + $0x268] sm:$0xff] }
 0x182   : > { %v551_v30 = vadd.f32 %v550_v25, %v404_v20  ;;  %v482_v31 = vadd.f32 %v481_v26, %v400_v21  ;;  %v552_v32 = vpop.f32.mrb[1].mxu1  ;;  %v801_v20 = vld [vmem:[#allocation6 + $0x238] sm:$0xff]  ;;  %v1649_v23 = vpack.c.bf16 %v803_v19, %v799_v15  ;;  %v802_v25 = vld [vmem:[#allocation6 + $0x260] sm:$0xff]  ;;  %v800_v26 = vld [vmem:[#allocation6 + $0x230] sm:$0xff] }
 0x183   : > { %v553_v36 = vadd.f32 %v552_v32, %v408_v22  ;;  %v555_v41 = vmax.f32 %v480_v24, 0.0  ;;  %v805_v21 = vld [vmem:[#allocation6 + $0x278] sm:$0xff]  ;;  %v1647_v22 = vpack.c.bf16 %v794_v9, %v790_v8  ;;  %v798_v24 = vld [vmem:[#allocation6 + $0x220] sm:$0xff]  ;;  %v1683_v34 = vpack.c.bf16 %v804_v28, %v800_v26  ;;  %v1048_v9 = vld [vmem:[#allocation9 + $0x388] sm:$0xff] }
 0x184   : > { %v556_v39 = vmax.f32 %v482_v31, 0.0  ;;  %v557_v49 = vmax.f32 %v551_v30, 0.0  ;;  %v1681_v27 = vpack.c.bf16 %v805_v21, %v801_v20  ;;  %v811_v30 = vld [vmem:[#allocation6 + $0x2e8] sm:$0xff]  ;;  %v809_v31 = vld [vmem:[#allocation6 + $0x2b8] sm:$0xff]  ;;  %v1651_v33 = vpack.c.bf16 %v802_v25, %v798_v24  ;;  %v1032_v20 = vld [vmem:[#allocation9 + $0x308] sm:$0xff] }
 0x185   : > { %v558_v42 = vmax.f32 %v553_v36, 0.0  ;;  %v813_v32 = vld [vmem:[#allocation6 + $0x2f8] sm:$0xff]  ;;  %v1653_v35 = vpack.c.bf16 %v811_v30, %v807_v29  ;;  %v806_v36 = vld [vmem:[#allocation6 + $0x2a0] sm:$0xff]  ;;  %v1031_v19 = vld [vmem:[#allocation9 + $0x300] sm:$0xff] }
 0x186   : > { %688 = vmatprep.mubr.f32.mxu0 %v556_v39  ;;  %v1685_v39 = vpack.c.bf16 %v813_v32, %v809_v31  ;;  %v1655_v45 = vpack.c.bf16 %v810_v37, %v806_v36  ;;  %v1017_v21 = vld [vmem:[#allocation9 + $0x290] sm:$0xff]  ;;  %v1050_v24 = vld [vmem:[#allocation9 + $0x398] sm:$0xff]  ;;  %v1019_v31 = vld [vmem:[#allocation9 + $0x2a0] sm:$0xff] }
 0x187   : > { %758 = vmatprep.mubr.f32.mxu1 %v558_v42  ;;  %689 = vmatmul.mubr.f32.vlgmr.msra.gmra.mrb[2].mxu0 %v555_v41  ;;  %v815_v41 = vld [vmem:[#allocation6 + $0x328] sm:$0xff]  ;;  %v1001_v26 = vld [vmem:[#allocation9 + $0x210] sm:$0xff]  ;;  %v1034_v30 = vld [vmem:[#allocation9 + $0x318] sm:$0xff] }
 0x188   : > { %759 = vmatmul.mubr.f32.vlgmr.msra.gmra.mrb[2].mxu1 %v557_v49  ;;  %1636 = vmatpush1.bf16.msra.mxu0 %v1635_v40  ;;  %v812_v40 = vld [vmem:[#allocation6 + $0x2f0] sm:$0xff]  ;;  %v819_v42 = vld [vmem:[#allocation6 + $0x368] sm:$0xff]  ;;  %v814_v49 = vld [vmem:[#allocation6 + $0x320] sm:$0xff] }
 0x189   : > { %1668 = vmatpush1.bf16.msra.mxu1 %v1667_v43  ;;  %1638 = vmatprep.subr.bf16.mxu0 %v1637_v44  ;;  %v817_v43 = vld [vmem:[#allocation6 + $0x338] sm:$0xff]  ;;  %v1687_v46 = vpack.c.bf16 %v812_v40, %v808_v38  ;;  %v1657_v47 = vpack.c.bf16 %v819_v42, %v815_v41  ;;  %v1020_v32 = vld [vmem:[#allocation9 + $0x2a8] sm:$0xff]  ;;  %v1003_v37 = vld [vmem:[#allocation9 + $0x220] sm:$0xff] }
 0x18a   : > { %1670 = vmatprep.subr.bf16.mxu1 %v1669_v50  ;;  %916 = vmatprep.mubr.f32.mxu0 %v2073_v0  ;;  %v821_v44 = vld [vmem:[#allocation6 + $0x378] sm:$0xff]  ;;  %v818_v50 = vld [vmem:[#allocation6 + $0x360] sm:$0xff]  ;;  %v1052_v36 = vld [vmem:[#allocation9 + $0x3a8] sm:$0xff] }
 0x18b   : > { %987 = vmatprep.mubr.f32.mxu1 %v2073_v0  ;;  %v1679_v0 = vpack.c.bf16 %v796_v12, %v792_v10  ;;  %v1689_v52 = vpack.c.bf16 %v821_v44, %v817_v43  ;;  %v999_v10 = vld [vmem:[#allocation9 + $0x200] sm:$0xff]  ;;  %v1033_v28 = vld [vmem:[#allocation9 + $0x310] sm:$0xff]  ;;  %v1036_v41 = vld [vmem:[#allocation9 + $0x328] sm:$0xff] }
 0x18c   : > { %1640 = vmatpush1.bf16.msra.mxu0 %v1639_v56  ;;  %v825_v56 = vld [vmem:[#allocation6 + $0x3b8] sm:$0xff]  ;;  %v1035_v40 = vld [vmem:[#allocation9 + $0x320] sm:$0xff]  ;;  %v1022_v44 = vld [vmem:[#allocation9 + $0x2b8] sm:$0xff] }
 0x18d   : > { %1672 = vmatpush1.bf16.msra.mxu1 %v1671_v57  ;;  %1642 = vmatprep.subr.bf16.mxu0 %v1641_v58  ;;  %v829_v57 = vld [vmem:[#allocation6 + $0x3f8] sm:$0xff]  ;;  %v1659_v58 = vpack.c.bf16 %v818_v50, %v814_v49  ;;  %v1054_v49 = vld [vmem:[#allocation9 + $0x3b8] sm:$0xff] }
 0x18e   : > { %1674 = vmatprep.subr.bf16.mxu1 %v1673_v62  ;;  %v826_v62 = vld [vmem:[#allocation6 + $0x3e0] sm:$0xff]  ;;  %v1693_v63 = vpack.c.bf16 %v829_v57, %v825_v56  ;;  %v1021_v43 = vld [vmem:[#allocation9 + $0x2b0] sm:$0xff]  ;;  %v1024_v56 = vld [vmem:[#allocation9 + $0x2c8] sm:$0xff] }
 0x18f   : > { %v1663_v3 = vpack.c.bf16 %v826_v62, %v822_v61  ;;  %v1005_v50 = vld [vmem:[#allocation9 + $0x230] sm:$0xff]  ;;  %v1055_v57 = vld [vmem:[#allocation9 + $0x3c0] sm:$0xff]  ;;  %v1713_v61 = vpack.c.bf16 %v1024_v56, %v1023_v55 }
 0x190   : > { %1644 = vmatpush1.bf16.msra.mxu0 %v1643_v5  ;;  %v1015_v5 = vld [vmem:[#allocation9 + $0x280] sm:$0xff] }
 0x191   : > { %1676 = vmatpush1.bf16.msra.mxu1 %v1675_v6  ;;  %1646 = vmatprep.subr.bf16.mxu0 %v1645_v7  ;;  %v1016_v6 = vld [vmem:[#allocation9 + $0x288] sm:$0xff]  ;;  %v1047_v7 = vld [vmem:[#allocation9 + $0x380] sm:$0xff] }
 0x192   : > { %1678 = vmatprep.subr.bf16.mxu1 %v1677_v11  ;;  %v1697_v8 = vpack.c.bf16 %v1016_v6, %v1015_v5  ;;  %v1000_v11 = vld [vmem:[#allocation9 + $0x208] sm:$0xff]  ;;  %v1729_v12 = vpack.c.bf16 %v1048_v9, %v1047_v7  ;;  %v1007_v62 = vld [vmem:[#allocation9 + $0x240] sm:$0xff]  ;;  %v1026_v5 = vld [vmem:[#allocation9 + $0x2d8] sm:$0xff] }
 0x193   : > { %v1699_v15 = vpack.c.bf16 %v1000_v11, %v999_v10  ;;  %v1057_v6 = vld [vmem:[#allocation9 + $0x3d0] sm:$0xff]  ;;  %v1058_v7 = vld [vmem:[#allocation9 + $0x3d8] sm:$0xff] }
 0x194   : > { %1648 = vmatpush1.bf16.msra.mxu0 %v1647_v22  ;;  %v1731_v22 = vpack.c.bf16 %v1032_v20, %v1031_v19  ;;  %v1009_v11 = vld [vmem:[#allocation9 + $0x250] sm:$0xff]  ;;  %v1749_v19 = vpack.c.bf16 %v1058_v7, %v1057_v6  ;;  %v1042_v20 = vld [vmem:[#allocation9 + $0x358] sm:$0xff] }
 0x195   : > { %1680 = vmatpush1.bf16.msra.mxu1 %v1679_v0  ;;  %1650 = vmatprep.subr.bf16.mxu0 %v1649_v23  ;;  %v1018_v0 = vld [vmem:[#allocation9 + $0x298] sm:$0xff]  ;;  %v1049_v23 = vld [vmem:[#allocation9 + $0x390] sm:$0xff] }
 0x196   : > { %1682 = vmatprep.subr.bf16.mxu1 %v1681_v27  ;;  %v1733_v25 = vpack.c.bf16 %v1050_v24, %v1049_v23  ;;  %v1002_v27 = vld [vmem:[#allocation9 + $0x218] sm:$0xff]  ;;  %v1060_v23 = vld [vmem:[#allocation9 + $0x3e8] sm:$0xff] }
 0x197   : > { %v1703_v29 = vpack.c.bf16 %v1002_v27, %v1001_v26  ;;  %v1011_v27 = vld [vmem:[#allocation9 + $0x260] sm:$0xff] }
 0x198   : > { %1652 = vmatpush1.bf16.msra.mxu0 %v1651_v33  ;;  %v1735_v33 = vpack.c.bf16 %v1034_v30, %v1033_v28  ;;  %v1012_v28 = vld [vmem:[#allocation9 + $0x268] sm:$0xff] }
 0x199   : > { %1684 = vmatpush1.bf16.msra.mxu1 %v1683_v34  ;;  %1654 = vmatprep.subr.bf16.mxu0 %v1653_v35  ;;  %v1705_v34 = vpack.c.bf16 %v1020_v32, %v1019_v31  ;;  %v1051_v35 = vld [vmem:[#allocation9 + $0x3a0] sm:$0xff]  ;;  %v1723_v30 = vpack.c.bf16 %v1012_v28, %v1011_v27  ;;  %v1044_v31 = vld [vmem:[#allocation9 + $0x368] sm:$0xff] }
 0x19a   : > { %1686 = vmatprep.subr.bf16.mxu1 %v1685_v39  ;;  %v1737_v38 = vpack.c.bf16 %v1052_v36, %v1051_v35  ;;  %v1004_v39 = vld [vmem:[#allocation9 + $0x228] sm:$0xff]  ;;  %v1061_v35 = vld [vmem:[#allocation9 + $0x3f0] sm:$0xff] }
 0x19b   : > { %v1707_v42 = vpack.c.bf16 %v1004_v39, %v1003_v37  ;;  %v1062_v37 = vld [vmem:[#allocation9 + $0x3f8] sm:$0xff] }
 0x19c   : > { %1656 = vmatpush1.bf16.msra.mxu0 %v1655_v45  ;;  %v1053_v45 = vld [vmem:[#allocation9 + $0x3b0] sm:$0xff]  ;;  %v1014_v39 = vld [vmem:[#allocation9 + $0x278] sm:$0xff] }
 0x19d   : > { %1688 = vmatpush1.bf16.msra.mxu1 %v1687_v46  ;;  %1658 = vmatprep.subr.bf16.mxu0 %v1657_v47  ;;  %v1739_v46 = vpack.c.bf16 %v1036_v41, %v1035_v40  ;;  %v1709_v47 = vpack.c.bf16 %v1022_v44, %v1021_v43  ;;  %v1757_v40 = vpack.c.bf16 %v1062_v37, %v1061_v35  ;;  %v1046_v43 = vld [vmem:[#allocation9 + $0x378] sm:$0xff] }
 0x19e   : > { %1690 = vmatprep.subr.bf16.mxu1 %v1689_v52  ;;  %v1741_v52 = vpack.c.bf16 %v1054_v49, %v1053_v45 }
 0x1a0   : > { %1660 = vmatpush1.bf16.msra.mxu0 %v1659_v58  ;;  %v1056_v58 = vld [vmem:[#allocation9 + $0x3c8] sm:$0xff] }
 0x1a1   : > { %1692 = vmatpush1.bf16.msra.mxu1 %v1691_v59  ;;  %1662 = vmatprep.subr.bf16.mxu0 %v1661_v60  ;;  %v1711_v59 = vpack.c.bf16 %v1006_v51, %v1005_v50  ;;  %v1743_v60 = vpack.c.bf16 %v1038_v54, %v1037_v53  ;;  %v1745_v2 = vpack.c.bf16 %v1056_v58, %v1055_v57  ;;  %v830_v53 = vld [vmem:[#allocation8 + $0x4] sm:$0xf] }
 0x1a2   : > { %1694 = vmatprep.subr.bf16.mxu1 %v1693_v63  ;;  %v1008_v63 = vld [vmem:[#allocation9 + $0x248] sm:$0xff]  ;;  %v835_v54 = vrot.slane %v830_v53, %v395_v14  ;;  %v843_v55 = vrot.slane %v830_v53, %v403_v16  ;;  %v839_v56 = vrot.slane %v830_v53, %v399_v17  ;;  %v847_v57 = vrot.slane %v830_v53, %v407_v18 }
 0x1a4   : > { %1664 = vmatpush1.bf16.msra.mxu0 %v1663_v3  ;;  %v1040_v3 = vld [vmem:[#allocation9 + $0x348] sm:$0xff] }
 0x1a5   : > { %1696 = vmatpush1.bf16.msra.mxu1 %v1695_v4  ;;  %1698 = vmatprep.subr.bf16.mxu0 %v1697_v8  ;;  %v1025_v4 = vld [vmem:[#allocation9 + $0x2d0] sm:$0xff]  ;;  %v1715_v8 = vpack.c.bf16 %v1008_v63, %v1007_v62  ;;  %v1747_v9 = vpack.c.bf16 %v1040_v3, %v1039_v1 }
 0x1a6   : > { %1730 = vmatprep.subr.bf16.mxu1 %v1729_v12  ;;  %v1717_v10 = vpack.c.bf16 %v1026_v5, %v1025_v4  ;;  %v1010_v12 = vld [vmem:[#allocation9 + $0x258] sm:$0xff] }
 0x1a7   : > { %917 = vmatmul.mubr.f32.vlgmr.msra.gmra.mrb[4].mxu0 %v2334_v48  ;;  %v1719_v24 = vpack.c.bf16 %v1010_v12, %v1009_v11 }
 0x1a8   : > { %988 = vmatmul.mubr.f32.vlgmr.msra.gmra.mrb[4].mxu1 %v2334_v48  ;;  %1700 = vmatpush3.bf16.msra.mxu0 %v1699_v15  ;;  %v1701_v48 = vpack.c.bf16 %v1018_v0, %v1017_v21  ;;  %v1041_v15 = vld [vmem:[#allocation9 + $0x350] sm:$0xff]  ;;  %v1027_v21 = vld [vmem:[#allocation9 + $0x2e0] sm:$0xff] }
 0x1a9   : > { %1732 = vmatpush3.bf16.msra.mxu1 %v1731_v22  ;;  %v1028_v22 = vld [vmem:[#allocation9 + $0x2e8] sm:$0xff]  ;;  %v1059_v0 = vld [vmem:[#allocation9 + $0x3e0] sm:$0xff] }
 0x1aa   : > { %1702 = vmatprep.subr.bf16.mxu0 %v1701_v48  ;;  %1734 = vmatprep.subr.bf16.mxu1 %v1733_v25  ;;  %v1751_v48 = vpack.c.bf16 %v1042_v20, %v1041_v15  ;;  %v1721_v25 = vpack.c.bf16 %v1028_v22, %v1027_v21  ;;  %v1753_v26 = vpack.c.bf16 %v1060_v23, %v1059_v0 }
 0x1ac   : > { %1704 = vmatpush3.bf16.msra.mxu0 %v1703_v29  ;;  %v1043_v29 = vld [vmem:[#allocation9 + $0x360] sm:$0xff] }
 0x1ad   : > { %1736 = vmatpush3.bf16.msra.mxu1 %v1735_v33  ;;  %1706 = vmatprep.subr.bf16.mxu0 %v1705_v34  ;;  %v1755_v32 = vpack.c.bf16 %v1044_v31, %v1043_v29  ;;  %v1029_v33 = vld [vmem:[#allocation9 + $0x2f0] sm:$0xff]  ;;  %v1030_v34 = vld [vmem:[#allocation9 + $0x2f8] sm:$0xff] }
 0x1ae   : > { %1738 = vmatprep.subr.bf16.mxu1 %v1737_v38  ;;  %v1725_v36 = vpack.c.bf16 %v1030_v34, %v1029_v33  ;;  %v1013_v38 = vld [vmem:[#allocation9 + $0x270] sm:$0xff] }
 0x1af   : > { %v1727_v41 = vpack.c.bf16 %v1014_v39, %v1013_v38 }
 0x1b0   : > { %1708 = vmatpush3.bf16.msra.mxu0 %v1707_v42  ;;  %v1045_v42 = vld [vmem:[#allocation9 + $0x370] sm:$0xff] }
 0x1b1   : > { %1740 = vmatpush3.bf16.msra.mxu1 %v1739_v46  ;;  %1710 = vmatprep.subr.bf16.mxu0 %v1709_v47  ;;  %v1759_v44 = vpack.c.bf16 %v1046_v43, %v1045_v42 }
 0x1b2   : > { %1742 = vmatprep.subr.bf16.mxu1 %v1741_v52 }
 0x1b4   : > { %1712 = vmatpush3.bf16.msra.mxu0 %v1711_v59 }
 0x1b5   : > { %1744 = vmatpush3.bf16.msra.mxu1 %v1743_v60  ;;  %1714 = vmatprep.subr.bf16.mxu0 %v1713_v61 }
 0x1b6   : > { %1746 = vmatprep.subr.bf16.mxu1 %v1745_v2 }
 0x1b8   : > { %1716 = vmatpush3.bf16.msra.mxu0 %v1715_v8 }
 0x1b9   : > { %1748 = vmatpush3.bf16.msra.mxu1 %v1747_v9  ;;  %1718 = vmatprep.subr.bf16.mxu0 %v1717_v10  ;;  %v1360_v9 = vld [vmem:[%s2426_s4] ss:$0 sm:$0xff] }
 0x1ba   : > { %1750 = vmatprep.subr.bf16.mxu1 %v1749_v19 }
 0x1bc   : > { %1720 = vmatpush3.bf16.msra.mxu0 %v1719_v24 }
 0x1bd   : > { %1752 = vmatpush3.bf16.msra.mxu1 %v1751_v48  ;;  %1722 = vmatprep.subr.bf16.mxu0 %v1721_v25 }
 0x1be   : > { %1754 = vmatprep.subr.bf16.mxu1 %v1753_v26 }
 0x1c0   : > { %1724 = vmatpush3.bf16.msra.mxu0 %v1723_v30 }
 0x1c1   : > { %1756 = vmatpush3.bf16.msra.mxu1 %v1755_v32  ;;  %1726 = vmatprep.subr.bf16.mxu0 %v1725_v36 }
 0x1c2   : > { %1758 = vmatprep.subr.bf16.mxu1 %v1757_v40 }
 0x1c4   : > { %1728 = vmatpush3.bf16.msra.mxu0 %v1727_v41 }
 0x1c5   : > { %1760 = vmatpush3.bf16.msra.mxu1 %v1759_v44 }
 0x25a   : > { %v1397_v45 = vpop.f32.mrb[2].mxu0 }
 0x25b   : > { %v1432_v46 = vpop.f32.mrb[2].mxu1  ;;  %v1398_v47 = vpop.f32.mrb[3].mxu0 }
 0x25c   : > { %v1399_v49 = vadd.f32 %v1398_v47, %v1397_v45  ;;  %v1433_v50 = vpop.f32.mrb[3].mxu1 }
 0x25d   : > { %v1434_v51 = vadd.f32 %v1433_v50, %v1432_v46 }
 0x25f   : > { %v761_v52 = vadd.f32 %v1434_v51, %v1399_v49 }
 0x27a   : > { %v918_v58 = vpop.f32.mrb[4].mxu0 }
 0x27b   : > { %v919_v59 = vadd.f32 %v918_v58, %v835_v54  ;;  %v989_v60 = vpop.f32.mrb[4].mxu1  ;;  %v920_v61 = vpop.f32.mrb[5].mxu0 }
 0x27c   : > { %v990_v62 = vadd.f32 %v989_v60, %v843_v55  ;;  %v921_v63 = vadd.f32 %v920_v61, %v839_v56  ;;  %v991_v1 = vpop.f32.mrb[5].mxu1 }
 0x27d   : > { %v992_v2 = vadd.f32 %v991_v1, %v847_v57  ;;  %v994_v14 = vmax.f32 %v919_v59, 0.0 }
 0x27e   : > { %v995_v3 = vmax.f32 %v921_v63, 0.0  ;;  %v996_v16 = vmax.f32 %v990_v62, 0.0 }
 0x27f   : > { %v997_v4 = vmax.f32 %v992_v2, 0.0 }
 0x280   : > { %1127 = vmatprep.mubr.f32.mxu0 %v995_v3 }
 0x281   : > { %1197 = vmatprep.mubr.f32.mxu1 %v997_v4  ;;  %1128 = vmatmul.mubr.f32.vlgmr.msra.gmra.mrb[6].mxu0 %v994_v14 }
 0x282   : > { %1198 = vmatmul.mubr.f32.vlgmr.msra.gmra.mrb[6].mxu1 %v996_v16 }
 0x354   : > { %v1467_v13 = vpop.f32.mrb[6].mxu0 }
 0x355   : > { %v1502_v17 = vpop.f32.mrb[6].mxu1  ;;  %v1468_v18 = vpop.f32.mrb[7].mxu0 }
 0x356   : > { %v1469_v5 = vadd.f32 %v1468_v18, %v1467_v13  ;;  %v1503_v6 = vpop.f32.mrb[7].mxu1 }
 0x357   : > { %v1504_v7 = vadd.f32 %v1503_v6, %v1502_v17 }
 0x359   : > { %v1200_v8 = vadd.f32 %v1504_v7, %v1469_v5 }
 0x35b   : > { %v1203_v10 = vadd.f32 %v1200_v8, %v761_v52 }
 0x35d   : > { %v1216_v11 = vadd.f32 %v1360_v9, %v1203_v10 }
 0x35f   : > { %1217 = vst [vmem:[%s317_s27] sm:$0xff] %v1216_v11 }
 0x360   : > { %1986 = shalt.err (!%p1983_p0)
}
 0x361   : > { %s1987_s25 = scalar_lea.hbm %s2373_s12, 128  ;;  %s1991_s18 = scalar_lea.hbm %s2427_s5, 256 }
 0x362   : > { %p1988_p4 = scmp.ne.s32.totalorder %s2373_s12, %s1987_s25  ;;  %p1992_p1 = scmp.lt.u32.totalorder %s2373_s12, %s2427_s5 }
 0x363   : > { %p1993_p12 = scmp.lt.u32.totalorder %s1991_s18, %s1987_s25  ;;  %p1995_p13 = scmp.lt.u32.totalorder %s1987_s25, %s2373_s12 }
 0x364   : > { %p1989_p2 = pnand %p1988_p4, %p2256_p10 }
 0x365   : > { %p1994_p11 = por %p1993_p12, %p1992_p1 }
 0x366   : > { %p1990_p8 = pneg %p1989_p2 }
 0x367   : > { %p1996_p6 = por %p1995_p13, %p1994_p11 }
 0x369   : > { %p1997_p3 = pnand %p1996_p6, %p1990_p8 }
 0x36b   : > { %2000 = shalt.err (!%p1997_p3)
}
 0x36c   : > { %1775 = dma.vmem_to_hbm [thread:$0]  (%p2256_p10), %s2375_s6, 128, %s2373_s12, %s1219_s14  }
 0x36d PF: > { %s2449_s28 = sld [smem:[#allocation16_spill]]  ;;  %s2450_s30 = sld [smem:[#allocation17_spill]] }
 0x36e   : > { %p2452_p7 = scmp.ge.s32.totalorder %s2063_s23, 2 }
 0x373   : > { %s1244_s27 = sand.u32 1, %s2449_s28   ;;  %p2451_p5 = scmp.ne.s32.totalorder %s2450_s30, 0 }
 0x374   : > { %s1245_s10 = scalar_lea.sflag [#allocation5], %s1244_s27 }
 0x375   : > { %p1792_p9 = pnand %p2452_p7, %p2451_p5 }
 0x377   : > { %2038 = dma.done.wait (!%p1792_p9), %s1245_s10, 128  }
 0x378   : > { %2040 = vsyncadd (!%p1792_p9), %s1245_s10, 4294967168  ;;  %s23_s23 = sadd.s32 1, %s2063_s23   ;;  %s2453_s18 = smov %s2047_s19 }
 0x379   : > { %p20_p0 = scmp.ge.s32.totalorder %s23_s23, 4   ;;  %s2454_s19 = smov %s2051_s20 }
 0x37a   : > { %s2455_s20 = smov %s2268_s15  ;;  %s2456_s21 = smov %s2059_s22 }
 0x37b   : > { %s2457_s22 = smov %s2459_s29  ;;  %22 = sbr.rel (!%p20_p0) target bundleno = 8 (0x8), region = 108 }
 0x382   :  { %1250 = vsyncpa [#allocation4], 1 }
 0x383   :  { %1252 = vsyncpa [#allocation4 + $0x1], 1 }
 0x384   :  { %1253 = vsyncpa [#allocation7], 1 }
 0x385   :  { %1254 = vsyncpa [#allocation10], 1 }
 0x386   :  { %1255 = vsyncpa [#allocation5], 1 }
 0x387   :  { %1257 = vsyncpa [#allocation5 + $0x1], 1 }

</bundles_post_ra>
